<compile_context>
chip_gen: v7x
topology: tpu7x:2x2x1
jax: 0.10.0
libtpu: 0.0.40
codegen_flags: <defaults>
</compile_context>

<pallas_src>
import jax
import jax.numpy as jnp
import numpy as np
from jax.experimental import pallas as pl
from jax.experimental.pallas import tpu as pltpu

# Small, module-consistent shapes (batch, seq, model_dim, ff_dim).
BATCH, SEQ, MODEL_DIM, FF_DIM = 2, 8, 128, 256


def ffn_kernel(x_ref, w1_ref, b1_ref, w2_ref, b2_ref, o_ref):
    """One row-tile of the position-wise feed-forward: (x @ W1 + b1) @ W2 + b2."""
    x = x_ref[...]                                               # [tm, D]
    h = jnp.dot(x, w1_ref[...],
                preferred_element_type=jnp.float32) + b1_ref[...]  # [tm, F]
    # TODO(synk): nn.Dropout is treated as identity (inference / eval semantics).
    y = jnp.dot(h, w2_ref[...],
                preferred_element_type=jnp.float32) + b2_ref[...]  # [tm, D]
    o_ref[...] = y.astype(o_ref.dtype)


def positionwise_feed_forward(x, w1_t, b1, w2_t, b2, *, tm=None):
    """x: [B, S, D] float32.
    w1_t: [D, F] (= torch linear_first.weight.T),  b1: [F]
    w2_t: [F, D] (= torch linear_second.weight.T), b2: [D]
    """
    B, S, D = x.shape
    F = w1_t.shape[1]
    M = B * S

    x2 = x.reshape(M, D)                 # lane-dense 2D slab
    b1_2 = b1.reshape(1, F)
    b2_2 = b2.reshape(1, D)

    # Single grid step at small shapes; row-tiled (and megacore-parallel) at
    # larger shapes.
    if tm is None:
        tm = M if M <= 256 else 256
    grid = (pl.cdiv(M, tm),)

    out2 = pl.pallas_call(
        ffn_kernel,
        out_shape=jax.ShapeDtypeStruct((M, D), x.dtype),
        grid_spec=pltpu.PrefetchScalarGridSpec(
            num_scalar_prefetch=0,
            grid=grid,
            in_specs=[
                pl.BlockSpec((tm, D), lambda i: (i, 0)),   # x row tile
                pl.BlockSpec((D, F), lambda i: (0, 0)),    # W1 (resident)
                pl.BlockSpec((1, F), lambda i: (0, 0)),    # b1 (resident)
                pl.BlockSpec((F, D), lambda i: (0, 0)),    # W2 (resident)
                pl.BlockSpec((1, D), lambda i: (0, 0)),    # b2 (resident)
            ],
            out_specs=pl.BlockSpec((tm, D), lambda i: (i, 0)),
        ),
        compiler_params=pltpu.CompilerParams(
            dimension_semantics=("parallel",)),
    )(x2, w1_t, b1_2, w2_t, b2_2)

    return out2.reshape(B, S, D)


# ------------------------- pure-JAX reference -------------------------
def reference_ffn(x, W1, b1, W2, b2):
    # Mirrors torch: linear_second(dropout(linear_first(x))), dropout = identity,
    # nn.Linear: y = x @ W.T + b with W stored [out, in].
    h = x @ W1.T + b1
    return h @ W2.T + b2


if __name__ == "__main__":
    key = jax.random.PRNGKey(0)
    k1, k2, k3, k4, kx = jax.random.split(key, 5)

    # torch-layout parameters ([out, in] weights), deterministic synthetic init.
    W1 = jax.random.normal(k1, (FF_DIM, MODEL_DIM), jnp.float32) * 0.1
    b1 = jax.random.normal(k2, (FF_DIM,), jnp.float32) * 0.1
    W2 = jax.random.normal(k3, (MODEL_DIM, FF_DIM), jnp.float32) * 0.1
    b2 = jax.random.normal(k4, (MODEL_DIM,), jnp.float32) * 0.1

    x = jax.random.normal(kx, (BATCH, SEQ, MODEL_DIM), jnp.float32)

    # Pre-transpose weights once in the wrapper so the kernel does x @ W + b.
    out = positionwise_feed_forward(x, W1.T, b1, W2.T, b2)
    out = jax.block_until_ready(out)

    ref = reference_ffn(x, W1, b1, W2, b2)
    np.testing.assert_allclose(np.asarray(out), np.asarray(ref),
                               rtol=1e-4, atol=1e-4)
    print("KERNEL_OK")
</pallas_src>

<mosaic_0001>
module attributes {stable_mosaic.version = 11 : i64} {
  func.func @ffn_kernel(%arg0: i32, %arg1: memref<16x128xf32, #tpu.memory_space<vmem>>, %arg2: memref<128x256xf32, #tpu.memory_space<vmem>>, %arg3: memref<1x256xf32, #tpu.memory_space<vmem>>, %arg4: memref<256x128xf32, #tpu.memory_space<vmem>>, %arg5: memref<1x128xf32, #tpu.memory_space<vmem>>, %arg6: memref<16x128xf32, #tpu.memory_space<vmem>>) attributes {dimension_semantics = [#tpu.dimension_semantics<parallel>], iteration_bounds = array<i64: 1>, scalar_prefetch = 0 : i64, scratch_operands = 0 : i64, tpu.core_type = #tpu.core_type<tc>, window_params = [{transform_indices = @transform_0, window_bounds = array<i64: 16, 128>}, {pipeline_mode = #tpu.pipeline_mode<synchronous>, transform_indices = @transform_1, window_bounds = array<i64: 128, 256>}, {pipeline_mode = #tpu.pipeline_mode<synchronous>, transform_indices = @transform_2, window_bounds = array<i64: 1, 256>}, {pipeline_mode = #tpu.pipeline_mode<synchronous>, transform_indices = @transform_3, window_bounds = array<i64: 256, 128>}, {pipeline_mode = #tpu.pipeline_mode<synchronous>, transform_indices = @transform_4, window_bounds = array<i64: 1, 128>}, {transform_indices = @transform_5, window_bounds = array<i64: 16, 128>}]} {
    %c0 = arith.constant 0 : index
    %c0_0 = arith.constant 0 : index
    %0 = vector.load %arg1[%c0, %c0_0] : memref<16x128xf32, #tpu.memory_space<vmem>>, vector<16x128xf32>
    %c0_1 = arith.constant 0 : index
    %c0_2 = arith.constant 0 : index
    %1 = vector.load %arg2[%c0_1, %c0_2] : memref<128x256xf32, #tpu.memory_space<vmem>>, vector<128x256xf32>
    %cst = arith.constant dense<0.000000e+00> : vector<16x256xf32>
    %2 = tpu.matmul %0, %1, %cst {dimension_numbers = #tpu.dot_dimension_numbers<[1], [0], [0], [1], [0, 0, 1, 1], [], []>} : vector<16x128xf32>, vector<128x256xf32>, vector<16x256xf32> -> vector<16x256xf32>
    %c0_3 = arith.constant 0 : index
    %c0_4 = arith.constant 0 : index
    %3 = vector.load %arg3[%c0_3, %c0_4] : memref<1x256xf32, #tpu.memory_space<vmem>>, vector<1x256xf32>
    %4 = vector.broadcast %3 : vector<1x256xf32> to vector<16x256xf32>
    %5 = arith.addf %2, %4 : vector<16x256xf32>
    %c0_5 = arith.constant 0 : index
    %c0_6 = arith.constant 0 : index
    %6 = vector.load %arg4[%c0_5, %c0_6] : memref<256x128xf32, #tpu.memory_space<vmem>>, vector<256x128xf32>
    %cst_7 = arith.constant dense<0.000000e+00> : vector<16x128xf32>
    %7 = tpu.matmul %5, %6, %cst_7 {dimension_numbers = #tpu.dot_dimension_numbers<[1], [0], [0], [1], [0, 0, 1, 1], [], []>} : vector<16x256xf32>, vector<256x128xf32>, vector<16x128xf32> -> vector<16x128xf32>
    %c0_8 = arith.constant 0 : index
    %c0_9 = arith.constant 0 : index
    %8 = vector.load %arg5[%c0_8, %c0_9] : memref<1x128xf32, #tpu.memory_space<vmem>>, vector<1x128xf32>
    %9 = vector.broadcast %8 : vector<1x128xf32> to vector<16x128xf32>
    %10 = arith.addf %7, %9 : vector<16x128xf32>
    %c0_10 = arith.constant 0 : index
    %c0_11 = arith.constant 0 : index
    %11 = vector.load %arg6[%c0_10, %c0_11] : memref<16x128xf32, #tpu.memory_space<vmem>>, vector<16x128xf32>
    tpu.vector_store %arg6[%c0_10, %c0_11], %10 {strides = array<i32>} : memref<16x128xf32, #tpu.memory_space<vmem>>, vector<16x128xf32>,
    return
  }
  func.func @transform_0(%arg0: i32) -> (i32, i32) {
    %c0_i32 = arith.constant 0 : i32
    %c0_i32_0 = arith.constant 0 : i32
    return %arg0, %c0_i32 : i32, i32
  }
  func.func @transform_1(%arg0: i32) -> (i32, i32) {
    %c0_i32 = arith.constant 0 : i32
    %c0_i32_0 = arith.constant 0 : i32
    %c0_i32_1 = arith.constant 0 : i32
    return %c0_i32, %c0_i32_0 : i32, i32
  }
  func.func @transform_2(%arg0: i32) -> (i32, i32) {
    %c0_i32 = arith.constant 0 : i32
    %c0_i32_0 = arith.constant 0 : i32
    %c0_i32_1 = arith.constant 0 : i32
    return %c0_i32, %c0_i32_0 : i32, i32
  }
  func.func @transform_3(%arg0: i32) -> (i32, i32) {
    %c0_i32 = arith.constant 0 : i32
    %c0_i32_0 = arith.constant 0 : i32
    %c0_i32_1 = arith.constant 0 : i32
    return %c0_i32, %c0_i32_0 : i32, i32
  }
  func.func @transform_4(%arg0: i32) -> (i32, i32) {
    %c0_i32 = arith.constant 0 : i32
    %c0_i32_0 = arith.constant 0 : i32
    %c0_i32_1 = arith.constant 0 : i32
    return %c0_i32, %c0_i32_0 : i32, i32
  }
  func.func @transform_5(%arg0: i32) -> (i32, i32) {
    %c0_i32 = arith.constant 0 : i32
    %c0_i32_0 = arith.constant 0 : i32
    return %arg0, %c0_i32 : i32, i32
  }
}

</mosaic_0001>

<bundles_post_ra>
// kernel: tpu_custom_call.1
= control target key start
LH: loop header
LB: loop body
LE: loop exit
PB: predicated region body
PF: predicated region fallthrough
CT: control target
= control target key end

     0   :  { %10 = vsyncpa [#allocation3], 0  ;;  %s629_s0 = inlined_call_operand.hbm [shape: f32[16,128], index: 0, kind: input, shape index: {}]   ;;  %s630_s1 = inlined_call_operand.hbm [shape: f32[128,256], index: 1, kind: input, shape index: {}]   ;;  %s631_s2 = inlined_call_operand.vmem [shape: f32[1,256], index: 2, kind: input, shape index: {}]   ;;  %s632_s3 = inlined_call_operand.hbm [shape: f32[256,128], index: 3, kind: input, shape index: {}]   ;;  %s633_s4 = inlined_call_operand.vmem [shape: f32[1,128], index: 4, kind: input, shape index: {}]   ;;  %s634_s5 = inlined_call_operand.hbm [shape: f32[16,128], index: 5, kind: output, shape index: {}]  }
   0x1   :  { %11 = vsyncpa [#allocation6], 0 }
   0x2   :  { %12 = vsyncpa [#allocation4], 0  ;;  %s525_s18 = smov [#allocation5]   ;;  %s431_s22 = scalar_lea.hbm %s630_s1, 4096 }
   0x3   :  { %s30_s19 = sshll.u32 %s525_s18, 4  ;;  %p432_p0 = scmp.ne.s32.totalorder %s630_s1, %s431_s22  ;;  %s31_s19 = int_to_ptr.vmem [resolvable:$true] %s30_s19 }
   0x4   :  { %p435_p1 = scmp.lt.u32.totalorder %s431_s22, %s630_s1 }
   0x6   :  { %p437_p2 = pnand %p435_p1, %p432_p0 }
   0x8   :  { %440 = shalt.err (!%p437_p2)
}
   0x9   :  { %s441_s27 = scalar_lea.vmem %s31_s19, 4096  ;;  %p446_p4 = scmp.lt.s32.totalorder %s31_s19, %s31_s19 }
   0xa   :  { %p442_p3 = scmp.ne.s32.totalorder %s31_s19, %s441_s27  ;;  %p447_p5 = scmp.lt.s32.totalorder %s441_s27, %s441_s27 }
   0xc   :  { %p448_p6 = por %p447_p5, %p446_p4 }
   0xe   :  { %p449_p7 = pnand %p448_p6, %p442_p3 }
  0x10   :  { %452 = shalt.err (!%p449_p7)
}
  0x11   :  { %s526_s28 = smov 256   ;;  %s527_s29 = smov 16  }
  0x12   :  { %36 = dma.hbm_to_vmem [thread:$0]  %s630_s1, 4096, %s31_s19, [#allocation6], %s526_s28, %s526_s28, %s527_s29  }
  0x13   :  { %s528_s7 = smov [#allocation2]   ;;  %s453_s11 = scalar_lea.hbm %s629_s0, 256 }
  0x14   :  { %s18_s8 = sshll.u32 %s528_s7, 4  ;;  %p454_p8 = scmp.ne.s32.totalorder %s629_s0, %s453_s11  ;;  %s19_s8 = int_to_ptr.vmem [resolvable:$true] %s18_s8 }
  0x15   :  { %p457_p9 = scmp.lt.u32.totalorder %s453_s11, %s629_s0 }
  0x17   :  { %p459_p10 = pnand %p457_p9, %p454_p8 }
  0x19   :  { %462 = shalt.err (!%p459_p10)
}
  0x1a   :  { %s463_s16 = scalar_lea.vmem %s19_s8, 256  ;;  %p468_p12 = scmp.lt.s32.totalorder %s19_s8, %s19_s8 }
  0x1b   :  { %p464_p11 = scmp.ne.s32.totalorder %s19_s8, %s463_s16  ;;  %p469_p13 = scmp.lt.s32.totalorder %s463_s16, %s463_s16 }
  0x1d   :  { %p470_p0 = por %p469_p13, %p468_p12 }
  0x1f   :  { %p471_p1 = pnand %p470_p0, %p464_p11 }
  0x21   :  { %474 = shalt.err (!%p471_p1)
}
  0x22   :  { %s529_s1 = smov 128   ;;  %s530_s17 = smov 8  }
  0x23   :  { %24 = dma.hbm_to_vmem [thread:$0]  %s629_s0, 256, %s19_s8, [#allocation3], %s529_s1, %s529_s1, %s530_s17  }
  0x24   :  { %s531_s20 = smov [#allocation7]   ;;  %s475_s24 = scalar_lea.hbm %s632_s3, 4096 }
  0x25   :  { %s44_s21 = sshll.u32 %s531_s20, 4  ;;  %p476_p2 = scmp.ne.s32.totalorder %s632_s3, %s475_s24  ;;  %s45_s21 = int_to_ptr.vmem [resolvable:$true] %s44_s21 }
  0x26   :  { %p479_p3 = scmp.lt.u32.totalorder %s475_s24, %s632_s3 }
  0x28   :  { %p481_p4 = pnand %p479_p3, %p476_p2 }
  0x2a   :  { %484 = shalt.err (!%p481_p4)
}
  0x2b   :  { %s485_s29 = scalar_lea.vmem %s45_s21, 4096  ;;  %p490_p6 = scmp.lt.s32.totalorder %s45_s21, %s45_s21 }
  0x2c   :  { %p486_p5 = scmp.ne.s32.totalorder %s45_s21, %s485_s29  ;;  %p491_p7 = scmp.lt.s32.totalorder %s485_s29, %s485_s29 }
  0x2e   :  { %p492_p8 = por %p491_p7, %p490_p6 }
  0x30   :  { %p493_p9 = pnand %p492_p8, %p486_p5 }
  0x32   :  { %496 = shalt.err (!%p493_p9)
}
  0x33   :  { %50 = dma.hbm_to_vmem [thread:$0]  %s632_s3, 4096, %s45_s21, [#allocation6], %s529_s1, %s529_s1, %s530_s17  }
  0x34   :  { %519 = dma.done.wait [#allocation3], 256  }
  0x35   :  { %520 = vsyncadd [#allocation3], 4294967040 }
  0x36   :  { %521 = dma.done.wait [#allocation6], 8192  }
  0x37   :  { %522 = vsyncadd [#allocation6], 4294959104  ;;  %v532_v0 = vmov 0.0   ;;  %v65_v1 = vld [vmem:[#allocation5 + $0x8] sm:$0xff]  ;;  %v67_v2 = vld [vmem:[#allocation5 + $0x18] sm:$0xff] }
  0x38   :  { %172 = vmatprep.mubr.f32.mxu0 %v532_v0  ;;  %v64_v3 = vld [vmem:[#allocation5] sm:$0xff]  ;;  %v358_v4 = vpack.c.bf16 %v67_v2, %v65_v1  ;;  %v66_v5 = vld [vmem:[#allocation5 + $0x10] sm:$0xff]  ;;  %v69_v6 = vld [vmem:[#allocation5 + $0x28] sm:$0xff] }
  0x39   :  { %v71_v7 = vld [vmem:[#allocation5 + $0x38] sm:$0xff]  ;;  %v360_v8 = vpack.c.bf16 %v66_v5, %v64_v3  ;;  %v68_v10 = vld [vmem:[#allocation5 + $0x20] sm:$0xff]  ;;  %v70_v11 = vld [vmem:[#allocation5 + $0x30] sm:$0xff] }
  0x3a   :  { %v362_v9 = vpack.c.bf16 %v71_v7, %v69_v6  ;;  %v73_v12 = vld [vmem:[#allocation5 + $0x48] sm:$0xff]  ;;  %359 = vmatprep.subr.bf16.mxu0 %v358_v4  ;;  %v75_v13 = vld [vmem:[#allocation5 + $0x58] sm:$0xff]  ;;  %v364_v14 = vpack.c.bf16 %v70_v11, %v68_v10  ;;  %v72_v16 = vld [vmem:[#allocation5 + $0x40] sm:$0xff] }
  0x3b   :  { %361 = vmatpush1.bf16.msra.mxu0 %v360_v8  ;;  %v366_v15 = vpack.c.bf16 %v75_v13, %v73_v12  ;;  %v74_v17 = vld [vmem:[#allocation5 + $0x50] sm:$0xff]  ;;  %v77_v18 = vld [vmem:[#allocation5 + $0x68] sm:$0xff]  ;;  %v79_v19 = vld [vmem:[#allocation5 + $0x78] sm:$0xff] }
  0x3c   :  { %363 = vmatprep.subr.bf16.mxu0 %v362_v9  ;;  %v368_v20 = vpack.c.bf16 %v74_v17, %v72_v16  ;;  %v370_v21 = vpack.c.bf16 %v79_v19, %v77_v18  ;;  %v76_v22 = vld [vmem:[#allocation5 + $0x60] sm:$0xff]  ;;  %v78_v23 = vld [vmem:[#allocation5 + $0x70] sm:$0xff]  ;;  %v81_v24 = vld [vmem:[#allocation5 + $0x88] sm:$0xff] }
  0x3d   :  { %v83_v25 = vld [vmem:[#allocation5 + $0x98] sm:$0xff]  ;;  %v80_v26 = vld [vmem:[#allocation5 + $0x80] sm:$0xff]  ;;  %v82_v27 = vld [vmem:[#allocation5 + $0x90] sm:$0xff]  ;;  %v372_v30 = vpack.c.bf16 %v78_v23, %v76_v22 }
  0x3e   :  { %v201_v28 = vld [vmem:[#allocation7 + $0x80] sm:$0xff]  ;;  %v202_v29 = vld [vmem:[#allocation7 + $0x88] sm:$0xff]  ;;  %v203_v35 = vld [vmem:[#allocation7 + $0x90] sm:$0xff]  ;;  %v374_v36 = vpack.c.bf16 %v83_v25, %v81_v24  ;;  %v376_v46 = vpack.c.bf16 %v82_v27, %v80_v26 }
  0x3f   :  { %365 = vmatpush1.bf16.msra.mxu0 %v364_v14  ;;  %v85_v31 = vld [vmem:[#allocation5 + $0xa8] sm:$0xff]  ;;  %v390_v32 = vpack.c.bf16 %v202_v29, %v201_v28  ;;  %v185_v33 = vld [vmem:[#allocation7] sm:$0xff]  ;;  %v204_v38 = vld [vmem:[#allocation7 + $0x98] sm:$0xff] }
  0x40   :  { %367 = vmatprep.subr.bf16.mxu0 %v366_v15  ;;  %v186_v34 = vld [vmem:[#allocation7 + $0x8] sm:$0xff]  ;;  %v187_v39 = vld [vmem:[#allocation7 + $0x10] sm:$0xff]  ;;  %v188_v40 = vld [vmem:[#allocation7 + $0x18] sm:$0xff]  ;;  %v394_v42 = vpack.c.bf16 %v204_v38, %v203_v35 }
  0x41   :  { %v392_v37 = vpack.c.bf16 %v186_v34, %v185_v33  ;;  %v87_v41 = vld [vmem:[#allocation5 + $0xb8] sm:$0xff]  ;;  %391 = vmatprep.subr.bf16.mxu1 %v390_v32  ;;  %v205_v43 = vld [vmem:[#allocation7 + $0xa0] sm:$0xff]  ;;  %v206_v44 = vld [vmem:[#allocation7 + $0xa8] sm:$0xff]  ;;  %v396_v45 = vpack.c.bf16 %v188_v40, %v187_v39 }
  0x42   :  { %v84_v47 = vld [vmem:[#allocation5 + $0xa0] sm:$0xff]  ;;  %v398_v48 = vpack.c.bf16 %v206_v44, %v205_v43  ;;  %v190_v50 = vld [vmem:[#allocation7 + $0x28] sm:$0xff]  ;;  %v378_v51 = vpack.c.bf16 %v87_v41, %v85_v31  ;;  %v86_v52 = vld [vmem:[#allocation5 + $0xb0] sm:$0xff] }
  0x43   :  { %369 = vmatpush1.bf16.msra.mxu0 %v368_v20  ;;  %393 = vmatpush3.bf16.msra.mxu1 %v392_v37  ;;  %v189_v49 = vld [vmem:[#allocation7 + $0x20] sm:$0xff]  ;;  %v207_v53 = vld [vmem:[#allocation7 + $0xb0] sm:$0xff]  ;;  %v208_v54 = vld [vmem:[#allocation7 + $0xb8] sm:$0xff]  ;;  %v380_v58 = vpack.c.bf16 %v86_v52, %v84_v47 }
  0x44   :  { %371 = vmatprep.subr.bf16.mxu0 %v370_v21  ;;  %395 = vmatprep.subr.bf16.mxu1 %v394_v42  ;;  %v89_v55 = vld [vmem:[#allocation5 + $0xc8] sm:$0xff]  ;;  %v91_v56 = vld [vmem:[#allocation5 + $0xd8] sm:$0xff]  ;;  %v400_v57 = vpack.c.bf16 %v190_v50, %v189_v49  ;;  %v88_v59 = vld [vmem:[#allocation5 + $0xc0] sm:$0xff]  ;;  %v402_v60 = vpack.c.bf16 %v208_v54, %v207_v53 }
  0x45   :  { %v191_v61 = vld [vmem:[#allocation7 + $0x30] sm:$0xff]  ;;  %v192_v62 = vld [vmem:[#allocation7 + $0x38] sm:$0xff]  ;;  %v382_v63 = vpack.c.bf16 %v91_v56, %v89_v55  ;;  %v209_v2 = vld [vmem:[#allocation7 + $0xc0] sm:$0xff] }
  0x46   :  { %v90_v1 = vld [vmem:[#allocation5 + $0xd0] sm:$0xff]  ;;  %v210_v3 = vld [vmem:[#allocation7 + $0xc8] sm:$0xff]  ;;  %v95_v5 = vld [vmem:[#allocation5 + $0xf8] sm:$0xff]  ;;  %v404_v6 = vpack.c.bf16 %v192_v62, %v191_v61 }
  0x47   :  { %373 = vmatpush1.bf16.msra.mxu0 %v372_v30  ;;  %397 = vmatpush3.bf16.msra.mxu1 %v396_v45  ;;  %v93_v4 = vld [vmem:[#allocation5 + $0xe8] sm:$0xff]  ;;  %v384_v7 = vpack.c.bf16 %v90_v1, %v88_v59  ;;  %v92_v8 = vld [vmem:[#allocation5 + $0xe0] sm:$0xff]  ;;  %v406_v9 = vpack.c.bf16 %v210_v3, %v209_v2  ;;  %v94_v13 = vld [vmem:[#allocation5 + $0xf0] sm:$0xff] }
  0x48   :  { %375 = vmatprep.subr.bf16.mxu0 %v374_v36  ;;  %399 = vmatprep.subr.bf16.mxu1 %v398_v48  ;;  %v193_v10 = vld [vmem:[#allocation7 + $0x40] sm:$0xff]  ;;  %v194_v11 = vld [vmem:[#allocation7 + $0x48] sm:$0xff]  ;;  %v386_v12 = vpack.c.bf16 %v95_v5, %v93_v4  ;;  %v211_v14 = vld [vmem:[#allocation7 + $0xd0] sm:$0xff]  ;;  %v388_v17 = vpack.c.bf16 %v94_v13, %v92_v8  ;;  %v98_v36 = vlaneseq }
  0x49   :  { %v212_v15 = vld [vmem:[#allocation7 + $0xd8] sm:$0xff]  ;;  %v408_v16 = vpack.c.bf16 %v194_v11, %v193_v10  ;;  %v195_v19 = vld [vmem:[#allocation7 + $0x50] sm:$0xff]  ;;  %v213_v21 = vld [vmem:[#allocation7 + $0xe0] sm:$0xff] }
  0x4a   :  { %v410_v18 = vpack.c.bf16 %v212_v15, %v211_v14  ;;  %v196_v20 = vld [vmem:[#allocation7 + $0x58] sm:$0xff]  ;;  %v214_v22 = vld [vmem:[#allocation7 + $0xe8] sm:$0xff]  ;;  %v62_v24 = vld [vmem:[#allocation2] sm:$0xff]  ;;  %v99_v37 = vshrl.u32 %v98_v36, 7 }
  0x4b   :  { %377 = vmatpush1.bf16.msra.mxu0 %v376_v46  ;;  %401 = vmatpush3.bf16.msra.mxu1 %v400_v57  ;;  %v412_v23 = vpack.c.bf16 %v196_v20, %v195_v19  ;;  %v414_v25 = vpack.c.bf16 %v214_v22, %v213_v21  ;;  %v197_v26 = vld [vmem:[#allocation7 + $0x60] sm:$0xff]  ;;  %v198_v27 = vld [vmem:[#allocation7 + $0x68] sm:$0xff]  ;;  %v63_v29 = vld [vmem:[#allocation2 + $0x8] sm:$0xff] }
  0x4c   :  { %379 = vmatprep.subr.bf16.mxu0 %v378_v51  ;;  %403 = vmatprep.subr.bf16.mxu1 %v402_v60  ;;  %v416_v28 = vpack.c.bf16 %v198_v27, %v197_v26  ;;  %v215_v30 = vld [vmem:[#allocation7 + $0xf0] sm:$0xff]  ;;  %v216_v31 = vld [vmem:[#allocation7 + $0xf8] sm:$0xff]  ;;  %v104_v38 = vsub.s32 1, %v99_v37 }
  0x4d   :  { %v418_v32 = vpack.c.bf16 %v216_v31, %v215_v30  ;;  %v199_v33 = vld [vmem:[#allocation7 + $0x70] sm:$0xff]  ;;  %v200_v34 = vld [vmem:[#allocation7 + $0x78] sm:$0xff] }
  0x4e   :  { %v420_v35 = vpack.c.bf16 %v200_v34, %v199_v33  ;;  %v96_v39 = vld [vmem:[%s631_s2] sm:$0x3]  ;;  %s533_s2 = smov [#allocation8]  }
  0x4f   :  { %381 = vmatpush1.bf16.msra.mxu0 %v380_v58  ;;  %405 = vmatpush3.bf16.msra.mxu1 %v404_v6  ;;  %v105_v40 = vrot.slane %v96_v39, %v104_v38  ;;  %v319_v51 = vld [vmem:[%s633_s4] ss:$0 sm:$0xff]  ;;  %s306_s9 = sshll.u32 %s533_s2, 4  ;;  %s307_s9 = int_to_ptr.vmem [resolvable:$true] %s306_s9 }
  0x50   :  { %383 = vmatprep.subr.bf16.mxu0 %v382_v63  ;;  %407 = vmatprep.subr.bf16.mxu1 %v406_v9  ;;  %s497_s10 = scalar_lea.vmem %s307_s9, 256  ;;  %p502_p11 = scmp.lt.s32.totalorder %s307_s9, %s307_s9 }
  0x51   :  { %p498_p10 = scmp.ne.s32.totalorder %s307_s9, %s497_s10  ;;  %p503_p12 = scmp.lt.s32.totalorder %s497_s10, %s497_s10 }
  0x53   :  { %385 = vmatpush1.bf16.msra.mxu0 %v384_v7  ;;  %409 = vmatpush3.bf16.msra.mxu1 %v408_v16  ;;  %p504_p13 = por %p503_p12, %p502_p11 }
  0x54   :  { %387 = vmatprep.subr.bf16.mxu0 %v386_v12  ;;  %411 = vmatprep.subr.bf16.mxu1 %v410_v18 }
  0x55   :  { %p505_p0 = pnand %p504_p13, %p498_p10 }
  0x57   :  { %389 = vmatpush1.bf16.msra.mxu0 %v388_v17  ;;  %413 = vmatpush3.bf16.msra.mxu1 %v412_v23 }
  0x58   :  { %415 = vmatprep.subr.bf16.mxu1 %v414_v25 }
  0x5a   :  { %173 = vmatmul.mubr.f32.vlgmr.msra.gmra.mrb[0].mxu0 %v62_v24 }
  0x5b   :  { %178 = vmatprep.mubr.f32.mxu0 %v532_v0  ;;  %417 = vmatpush3.bf16.msra.mxu1 %v416_v28  ;;  %v100_v0 = vsub.s32 0, %v99_v37 }
  0x5c   :  { %419 = vmatprep.subr.bf16.mxu1 %v418_v32 }
  0x5d   :  { %v101_v41 = vrot.slane %v96_v39, %v100_v0 }
  0x5e   :  { %179 = vmatmul.mubr.f32.gmra.mrb[2].mxu0 %v63_v29 }
  0x5f   :  { %421 = vmatpush3.bf16.msra.mxu1 %v420_v35 }
 0x12d   :  { %v174_v42 = vpop.f32.mrb[0].mxu0 }
 0x12e   :  { %v176_v43 = vpop.f32.mrb[1].mxu0  ;;  %v175_v45 = vadd.f32 %v174_v42, %v101_v41 }
 0x12f   :  { %v177_v44 = vadd.f32 %v176_v43, %v105_v40 }
 0x131   :  { %v180_v46 = vpop.f32.mrb[2].mxu0  ;;  %288 = vmatprep.mubr.f32.mxu1 %v177_v44 }
 0x132   :  { %v182_v47 = vpop.f32.mrb[3].mxu0  ;;  %289 = vmatmul.mubr.f32.vlgmr.msra.gmra.mrb[0].mxu1 %v175_v45  ;;  %v181_v49 = vadd.f32 %v180_v46, %v101_v41 }
 0x133   :  { %v183_v48 = vadd.f32 %v182_v47, %v105_v40 }
 0x135   :  { %293 = vmatprep.mubr.f32.mxu1 %v183_v48 }
 0x136   :  { %294 = vmatmul.mubr.f32.gmra.mrb[2].mxu1 %v181_v49 }
 0x205   :  { %v352_v50 = vpop.f32.mrb[0].mxu1 }
 0x206   :  { %v353_v52 = vpop.f32.mrb[1].mxu1 }
 0x207   :  { %v354_v53 = vadd.f32 %v353_v52, %v352_v50 }
 0x209   :  { %v291_v54 = vadd.f32 %v354_v53, %v319_v51  ;;  %v355_v55 = vpop.f32.mrb[2].mxu1 }
 0x20a   :  { %v356_v56 = vpop.f32.mrb[3].mxu1 }
 0x20b   :  { %299 = vst [vmem:[#allocation8] sm:$0xff] %v291_v54  ;;  %v357_v57 = vadd.f32 %v356_v56, %v355_v55 }
 0x20d   :  { %v296_v58 = vadd.f32 %v357_v57, %v319_v51 }
 0x20f   :  { %300 = vst [vmem:[#allocation8 + $0x8] sm:$0xff] %v296_v58 }
 0x210   :  { %508 = shalt.err (!%p505_p0)
}
 0x211   :  { %s509_s12 = scalar_lea.hbm %s634_s5, 256 }
 0x212   :  { %p510_p1 = scmp.ne.s32.totalorder %s634_s5, %s509_s12  ;;  %p513_p2 = scmp.lt.u32.totalorder %s509_s12, %s634_s5 }
 0x214   :  { %p515_p3 = pnand %p513_p2, %p510_p1 }
 0x216   :  { %518 = shalt.err (!%p515_p3)
}
 0x217   :  { %312 = dma.vmem_to_hbm [thread:$0]  %s307_s9, 256, %s634_s5, [#allocation4], %s529_s1, %s529_s1, %s530_s17  }
 0x218   :  { %523 = dma.done.wait [#allocation4], 256  }
 0x219   :  { %524 = vsyncadd [#allocation4], 4294967040 }
 0x21a   :  { %316 = vsyncpa [#allocation3], 1 }
 0x21b   :  { %317 = vsyncpa [#allocation6], 1 }
 0x21c   :  { %318 = vsyncpa [#allocation4], 1 }

</bundles_post_ra>
